<compile_context>
chip_gen: v7x
topology: tpu7x:2x2x1
jax: 0.10.0
libtpu: 0.0.40
codegen_flags: <defaults>
</compile_context>

<pallas_src>
import math

import jax
import jax.numpy as jnp
from jax.experimental import pallas as pl
from jax.experimental.pallas import tpu as pltpu

IN_FEATURES = 106
HIDDEN = IN_FEATURES * 2          # 212
OUT_FEATURES = 1
SIGMA_INIT = 0.017

# Lane-aligned padded feature sizes (128-lane vregs).
IN_PAD = 128
HID_PAD = 256


def _round_up(n, m):
    return (n + m - 1) // m * m


def _pad_to(a, shape):
    return jnp.pad(a, [(0, t - s) for s, t in zip(a.shape, shape)])


def _dqn_noisy_kernel(x_ref, w1_ref, b1_ref, w2_ref, b2_ref, w3_ref, b3_ref,
                      o_ref, xpad_ref):
    """One batch tile: x (TB, 106) f32 -> out (TB, 1) f32."""
    cdt = w1_ref.dtype            # compute dtype (bf16 or f32)

    # In-kernel zero-pad of the 106 input features to 128 lanes.  The padded
    # tail is exactly zero, so it contributes nothing to the layer-1
    # contraction; doing it here avoids a second full HBM pass over x.
    xpad_ref[...] = jnp.zeros(xpad_ref.shape, xpad_ref.dtype)
    xpad_ref[:, :IN_FEATURES] = x_ref[...].astype(xpad_ref.dtype)
    x = xpad_ref[...].astype(cdt)

    # Layer 1: Linear(128 -> 256) + ReLU, f32 accumulation on the MXU.
    h1 = jnp.dot(x, w1_ref[...], preferred_element_type=jnp.float32)
    h1 = jnp.maximum(h1 + b1_ref[...], 0.0)

    # Layer 2: Linear(256 -> 256) + ReLU.
    h2 = jnp.dot(h1.astype(cdt), w2_ref[...],
                 preferred_element_type=jnp.float32)
    h2 = jnp.maximum(h2 + b2_ref[...], 0.0)

    # Layer 3: NoisyLinear(256 -> 1).  out_features == 1, so a VPU multiply +
    # XLU row reduce beats a skinny MXU matmul.  w3/b3 were pre-combined with
    # sigma * eps once in the wrapper; b3 is a single SMEM scalar.
    out = jnp.sum(h2 * w3_ref[...], axis=-1, keepdims=True) + b3_ref[0, 0]
    # TODO(synk): lane-dense (1, TB) output slab would remove this masked
    # column store.
    o_ref[...] = out.astype(o_ref.dtype)


def prepare_params(params, compute_dtype=jnp.bfloat16):
    """Pad / cast the static (non-noisy) weights ONCE; reuse across calls."""
    return {
        "w1": _pad_to(params["w1"], (IN_PAD, HID_PAD)).astype(compute_dtype),
        "b1": _pad_to(params["b1"], (1, HID_PAD)).astype(jnp.float32),
        "w2": _pad_to(params["w2"], (HID_PAD, HID_PAD)).astype(compute_dtype),
        "b2": _pad_to(params["b2"], (1, HID_PAD)).astype(jnp.float32),
    }


def dqn_noisy_forward(x, params, eps_w3, eps_b3, *, prepared=None,
                      compute_dtype=jnp.bfloat16, batch_tile=1024):
    """x: (B, 106) float32 -> (B, 1) float32."""
    if prepared is None:
        prepared = prepare_params(params, compute_dtype)
    else:
        compute_dtype = prepared["w1"].dtype

    batch = x.shape[0]
    row_mult = 16 if compute_dtype == jnp.bfloat16 else 8
    batch_tile = max(row_mult, (batch_tile // row_mult) * row_mult)
    b_min = _round_up(max(batch, row_mult), row_mult)
    # Shape the grid so the "parallel" batch axis has >= 2 steps when there is
    # enough work, so both v7x TensorCores are busy; cap tiles at batch_tile.
    tb = max(row_mult,
             min(batch_tile, _round_up(pl.cdiv(b_min, 2), row_mult)))
    b_pad = _round_up(b_min, tb)
    grid = (b_pad // tb,)

    # Only a batch-row pad (no-op for tile-multiple batches); no feature pad
    # or dtype cast of x in HBM -- that happens in-kernel.
    if b_pad != batch:
        x = jnp.pad(x, ((0, b_pad - batch), (0, 0)))

    # Per-call noisy combine (tiny: 212 + 1 elements), kept in f32.
    w3_eff = (params["w3"] + params["sigma_w3"] * eps_w3).reshape(1, HIDDEN)
    w3_eff = _pad_to(w3_eff, (1, HID_PAD)).astype(jnp.float32)
    b3_eff = (params["b3"] + params["sigma_b3"] * eps_b3).reshape(1, 1)
    b3_eff = b3_eff.astype(jnp.float32)

    resident = lambda i: (0, 0)   # weights/biases: same block every grid step

    out = pl.pallas_call(
        _dqn_noisy_kernel,
        out_shape=jax.ShapeDtypeStruct((b_pad, OUT_FEATURES), jnp.float32),
        grid=grid,
        in_specs=[
            pl.BlockSpec((tb, IN_FEATURES), lambda i: (i, 0)),     # x tile
            pl.BlockSpec((IN_PAD, HID_PAD), resident),             # w1
            pl.BlockSpec((1, HID_PAD), resident),                  # b1
            pl.BlockSpec((HID_PAD, HID_PAD), resident),            # w2
            pl.BlockSpec((1, HID_PAD), resident),                  # b2
            pl.BlockSpec((1, HID_PAD), resident),                  # w3 row
            pl.BlockSpec(memory_space=pltpu.MemorySpace.SMEM),     # b3 scalar
        ],
        out_specs=pl.BlockSpec((tb, OUT_FEATURES), lambda i: (i, 0)),
        scratch_shapes=[pltpu.VMEM((tb, IN_PAD), jnp.float32)],    # x pad buf
        compiler_params=pltpu.CompilerParams(
            dimension_semantics=("parallel",)),
    )(x, prepared["w1"], prepared["b1"], prepared["w2"], prepared["b2"],
      w3_eff, b3_eff)
    return out[:batch]


def init_params(key):
    """Deterministic parameter init mirroring the PyTorch module shapes."""
    ks = jax.random.split(key, 6)

    def uniform(k, shape, bound):
        return jax.random.uniform(k, shape, jnp.float32, -bound, bound)

    # nn.Linear default init ~ U(-1/sqrt(in), 1/sqrt(in))
    std1 = 1.0 / math.sqrt(IN_FEATURES)
    std2 = 1.0 / math.sqrt(HIDDEN)
    # NoisyLinear.reset_parameters: U(-sqrt(3/in), sqrt(3/in))
    std3 = math.sqrt(3.0 / HIDDEN)

    return {
        # stored as (in, out) so the kernel computes x @ W
        "w1": uniform(ks[0], (IN_FEATURES, HIDDEN), std1),
        "b1": uniform(ks[1], (1, HIDDEN), std1),
        "w2": uniform(ks[2], (HIDDEN, HIDDEN), std2),
        "b2": uniform(ks[3], (1, HIDDEN), std2),
        "w3": uniform(ks[4], (HIDDEN, OUT_FEATURES), std3),
        "b3": uniform(ks[5], (1, OUT_FEATURES), std3),
        "sigma_w3": jnp.full((HIDDEN, OUT_FEATURES), SIGMA_INIT, jnp.float32),
        "sigma_b3": jnp.full((1, OUT_FEATURES), SIGMA_INIT, jnp.float32),
    }


def reference_forward(x, params, eps_w3, eps_b3):
    h1 = jnp.maximum(x @ params["w1"] + params["b1"], 0.0)
    h2 = jnp.maximum(h1 @ params["w2"] + params["b2"], 0.0)
    w3 = params["w3"] + params["sigma_w3"] * eps_w3
    b3 = params["b3"] + params["sigma_b3"] * eps_b3
    return h2 @ w3 + b3


if __name__ == "__main__":
    key = jax.random.PRNGKey(0)
    k_params, k_x, k_ew, k_eb, k_xl = jax.random.split(key, 5)

    params = init_params(k_params)
    # NoisyLinear noise: epsilon_weight.normal_(), epsilon_bias.normal_()
    eps_w3 = jax.random.normal(k_ew, (HIDDEN, OUT_FEATURES), jnp.float32)
    eps_b3 = jax.random.normal(k_eb, (1, OUT_FEATURES), jnp.float32)

    # Padded / cast static weights prepared ONCE and reused across calls.
    prep_f32 = prepare_params(params, jnp.float32)
    prep_bf16 = prepare_params(params, jnp.bfloat16)

    # Small batch, f32 compute: tight check against the pure-JAX reference.
    x = jax.random.normal(k_x, (8, IN_FEATURES), jnp.float32)
    out = jax.block_until_ready(
        dqn_noisy_forward(x, params, eps_w3, eps_b3, prepared=prep_f32))
    ref = reference_forward(x, params, eps_w3, eps_b3)
    assert out.shape == (8, OUT_FEATURES)
    assert jnp.allclose(out, ref, atol=1e-4, rtol=1e-4)

    # Larger, non-tile-multiple batch exercises the multi-step pipelined grid
    # (>= 2 steps also covers the v7x two-TensorCore split).
    xl = jax.random.normal(k_xl, (1000, IN_FEATURES), jnp.float32)
    refl = reference_forward(xl, params, eps_w3, eps_b3)
    outl = jax.block_until_ready(
        dqn_noisy_forward(xl, params, eps_w3, eps_b3, prepared=prep_f32,
                          batch_tile=256))
    assert outl.shape == (1000, OUT_FEATURES)
    assert jnp.allclose(outl, refl, atol=1e-4, rtol=1e-4)

    # Default path: bf16 MXU operands, f32 accumulation (fast on v5e/v6e/v7x).
    outb = jax.block_until_ready(
        dqn_noisy_forward(xl, params, eps_w3, eps_b3, prepared=prep_bf16))
    assert outb.shape == (1000, OUT_FEATURES)
    assert jnp.allclose(outb, refl, atol=5e-2, rtol=5e-2)

    print("KERNEL_OK")
</pallas_src>

<mosaic_0001>
module attributes {stable_mosaic.version = 11 : i64} {
  func.func @_dqn_noisy_kernel(%arg0: i32, %arg1: memref<8x106xf32, #tpu.memory_space<vmem>>, %arg2: memref<128x256xf32, #tpu.memory_space<vmem>>, %arg3: memref<1x256xf32, #tpu.memory_space<vmem>>, %arg4: memref<256x256xf32, #tpu.memory_space<vmem>>, %arg5: memref<1x256xf32, #tpu.memory_space<vmem>>, %arg6: memref<1x256xf32, #tpu.memory_space<vmem>>, %arg7: memref<1x1xf32, #tpu.memory_space<smem>>, %arg8: memref<8x1xf32, #tpu.memory_space<vmem>>, %arg9: memref<8x128xf32, #tpu.memory_space<vmem>>) attributes {dimension_semantics = [#tpu.dimension_semantics<parallel>], iteration_bounds = array<i64: 1>, scalar_prefetch = 0 : i64, scratch_operands = 1 : i64, tpu.core_type = #tpu.core_type<tc>, window_params = [{transform_indices = @transform_0, window_bounds = array<i64: 8, 106>}, {pipeline_mode = #tpu.pipeline_mode<synchronous>, transform_indices = @transform_1, window_bounds = array<i64: 128, 256>}, {pipeline_mode = #tpu.pipeline_mode<synchronous>, transform_indices = @transform_2, window_bounds = array<i64: 1, 256>}, {pipeline_mode = #tpu.pipeline_mode<synchronous>, transform_indices = @transform_3, window_bounds = array<i64: 256, 256>}, {pipeline_mode = #tpu.pipeline_mode<synchronous>, transform_indices = @transform_4, window_bounds = array<i64: 1, 256>}, {pipeline_mode = #tpu.pipeline_mode<synchronous>, transform_indices = @transform_5, window_bounds = array<i64: 1, 256>}, {transform_indices = @transform_6, window_bounds = array<i64: 1, 1>}, {transform_indices = @transform_7, window_bounds = array<i64: 8, 1>}]} {
    %cst = arith.constant 0.000000e+00 : f32
    %0 = vector.broadcast %cst : f32 to vector<8x128xf32>
    %c0 = arith.constant 0 : index
    %c0_0 = arith.constant 0 : index
    %1 = vector.load %arg9[%c0, %c0_0] : memref<8x128xf32, #tpu.memory_space<vmem>>, vector<8x128xf32>
    tpu.vector_store %arg9[%c0, %c0_0], %0 {strides = array<i32>} : memref<8x128xf32, #tpu.memory_space<vmem>>, vector<8x128xf32>,
    %c0_1 = arith.constant 0 : index
    %c0_2 = arith.constant 0 : index
    %2 = vector.load %arg1[%c0_1, %c0_2] : memref<8x106xf32, #tpu.memory_space<vmem>>, vector<8x106xf32>
    %c0_3 = arith.constant 0 : index
    %c0_4 = arith.constant 0 : index
    %3 = vector.load %arg9[%c0_3, %c0_4] : memref<8x128xf32, #tpu.memory_space<vmem>>, vector<8x106xf32>
    tpu.vector_store %arg9[%c0_3, %c0_4], %2 {strides = array<i32>} : memref<8x128xf32, #tpu.memory_space<vmem>>, vector<8x106xf32>,
    %c0_5 = arith.constant 0 : index
    %c0_6 = arith.constant 0 : index
    %4 = vector.load %arg9[%c0_5, %c0_6] : memref<8x128xf32, #tpu.memory_space<vmem>>, vector<8x128xf32>
    %c0_7 = arith.constant 0 : index
    %c0_8 = arith.constant 0 : index
    %5 = vector.load %arg2[%c0_7, %c0_8] : memref<128x256xf32, #tpu.memory_space<vmem>>, vector<128x256xf32>
    %cst_9 = arith.constant dense<0.000000e+00> : vector<8x256xf32>
    %6 = tpu.matmul %4, %5, %cst_9 {dimension_numbers = #tpu.dot_dimension_numbers<[1], [0], [0], [1], [0, 0, 1, 1], [], []>} : vector<8x128xf32>, vector<128x256xf32>, vector<8x256xf32> -> vector<8x256xf32>
    %c0_10 = arith.constant 0 : index
    %c0_11 = arith.constant 0 : index
    %7 = vector.load %arg3[%c0_10, %c0_11] : memref<1x256xf32, #tpu.memory_space<vmem>>, vector<1x256xf32>
    %8 = vector.broadcast %7 : vector<1x256xf32> to vector<8x256xf32>
    %9 = arith.addf %6, %8 : vector<8x256xf32>
    %cst_12 = arith.constant 0.000000e+00 : f32
    %10 = vector.broadcast %cst_12 : f32 to vector<8x256xf32>
    %11 = arith.maximumf %9, %10 : vector<8x256xf32>
    %c0_13 = arith.constant 0 : index
    %c0_14 = arith.constant 0 : index
    %12 = vector.load %arg4[%c0_13, %c0_14] : memref<256x256xf32, #tpu.memory_space<vmem>>, vector<256x256xf32>
    %cst_15 = arith.constant dense<0.000000e+00> : vector<8x256xf32>
    %13 = tpu.matmul %11, %12, %cst_15 {dimension_numbers = #tpu.dot_dimension_numbers<[1], [0], [0], [1], [0, 0, 1, 1], [], []>} : vector<8x256xf32>, vector<256x256xf32>, vector<8x256xf32> -> vector<8x256xf32>
    %c0_16 = arith.constant 0 : index
    %c0_17 = arith.constant 0 : index
    %14 = vector.load %arg5[%c0_16, %c0_17] : memref<1x256xf32, #tpu.memory_space<vmem>>, vector<1x256xf32>
    %15 = vector.broadcast %14 : vector<1x256xf32> to vector<8x256xf32>
    %16 = arith.addf %13, %15 : vector<8x256xf32>
    %cst_18 = arith.constant 0.000000e+00 : f32
    %17 = vector.broadcast %cst_18 : f32 to vector<8x256xf32>
    %18 = arith.maximumf %16, %17 : vector<8x256xf32>
    %c0_19 = arith.constant 0 : index
    %c0_20 = arith.constant 0 : index
    %19 = vector.load %arg6[%c0_19, %c0_20] : memref<1x256xf32, #tpu.memory_space<vmem>>, vector<1x256xf32>
    %20 = vector.broadcast %19 : vector<1x256xf32> to vector<8x256xf32>
    %21 = arith.mulf %18, %20 : vector<8x256xf32>
    %cst_21 = arith.constant dense<0.000000e+00> : vector<8xf32>
    %22 = vector.multi_reduction <add>, %21, %cst_21 [1] : vector<8x256xf32> to vector<8xf32>
    %23 = vector.shape_cast %22 : vector<8xf32> to vector<8x1xf32>
    %c0_22 = arith.constant 0 : index
    %c0_23 = arith.constant 0 : index
    %24 = memref.load %arg7[%c0_22, %c0_23] : memref<1x1xf32, #tpu.memory_space<smem>>
    %25 = vector.broadcast %24 : f32 to vector<8x1xf32>
    %26 = arith.addf %23, %25 : vector<8x1xf32>
    %c0_24 = arith.constant 0 : index
    %c0_25 = arith.constant 0 : index
    %27 = vector.load %arg8[%c0_24, %c0_25] : memref<8x1xf32, #tpu.memory_space<vmem>>, vector<8x1xf32>
    tpu.vector_store %arg8[%c0_24, %c0_25], %26 {strides = array<i32>} : memref<8x1xf32, #tpu.memory_space<vmem>>, vector<8x1xf32>,
    return
  }
  func.func @transform_0(%arg0: i32) -> (i32, i32) {
    %c0_i32 = arith.constant 0 : i32
    %c0_i32_0 = arith.constant 0 : i32
    return %arg0, %c0_i32 : i32, i32
  }
  func.func @transform_1(%arg0: i32) -> (i32, i32) {
    %c0_i32 = arith.constant 0 : i32
    %c0_i32_0 = arith.constant 0 : i32
    %c0_i32_1 = arith.constant 0 : i32
    return %c0_i32, %c0_i32_0 : i32, i32
  }
  func.func @transform_2(%arg0: i32) -> (i32, i32) {
    %c0_i32 = arith.constant 0 : i32
    %c0_i32_0 = arith.constant 0 : i32
    %c0_i32_1 = arith.constant 0 : i32
    return %c0_i32, %c0_i32_0 : i32, i32
  }
  func.func @transform_3(%arg0: i32) -> (i32, i32) {
    %c0_i32 = arith.constant 0 : i32
    %c0_i32_0 = arith.constant 0 : i32
    %c0_i32_1 = arith.constant 0 : i32
    return %c0_i32, %c0_i32_0 : i32, i32
  }
  func.func @transform_4(%arg0: i32) -> (i32, i32) {
    %c0_i32 = arith.constant 0 : i32
    %c0_i32_0 = arith.constant 0 : i32
    %c0_i32_1 = arith.constant 0 : i32
    return %c0_i32, %c0_i32_0 : i32, i32
  }
  func.func @transform_5(%arg0: i32) -> (i32, i32) {
    %c0_i32 = arith.constant 0 : i32
    %c0_i32_0 = arith.constant 0 : i32
    %c0_i32_1 = arith.constant 0 : i32
    return %c0_i32, %c0_i32_0 : i32, i32
  }
  func.func @transform_6(%arg0: i32) -> (i32, i32) {
    %c0_i32 = arith.constant 0 : i32
    %c0_i32_0 = arith.constant 0 : i32
    %c0_i32_1 = arith.constant 0 : i32
    return %c0_i32, %c0_i32_0 : i32, i32
  }
  func.func @transform_7(%arg0: i32) -> (i32, i32) {
    %c0_i32 = arith.constant 0 : i32
    %c0_i32_0 = arith.constant 0 : i32
    return %arg0, %c0_i32 : i32, i32
  }
}

</mosaic_0001>

<bundles_post_ra>
// kernel: tpu_custom_call.1
= control target key start
LH: loop header
LB: loop body
LE: loop exit
PB: predicated region body
PF: predicated region fallthrough
CT: control target
= control target key end

     0   :  { %13 = vsyncpa [#allocation5], 0  ;;  %s640_s0 = inlined_call_operand.hbm [shape: f32[8,106], index: 0, kind: input, shape index: {}]   ;;  %s641_s1 = inlined_call_operand.hbm [shape: f32[128,256], index: 1, kind: input, shape index: {}]   ;;  %s642_s2 = inlined_call_operand.vmem [shape: f32[1,256], index: 2, kind: input, shape index: {}]   ;;  %s643_s3 = inlined_call_operand.hbm [shape: f32[256,256], index: 3, kind: input, shape index: {}]   ;;  %s644_s4 = inlined_call_operand.vmem [shape: f32[1,256], index: 4, kind: input, shape index: {}]   ;;  %s645_s5 = inlined_call_operand.vmem [shape: f32[1,256], index: 5, kind: input, shape index: {}]   ;;  %s646_s6 = inlined_call_operand.<no memory space> [shape: f32[1,1], index: 6, kind: input, shape index: {}]   ;;  %s647_s7 = inlined_call_operand.vmem [shape: f32[8,1], index: 7, kind: output, shape index: {}]  }
   0x1   :  { %14 = vsyncpa [#allocation7], 0  ;;  %s537_s24 = smov [#allocation6]   ;;  %s467_s28 = scalar_lea.hbm %s641_s1, 4096 }
   0x2   :  { %s30_s25 = sshll.u32 %s537_s24, 4  ;;  %p468_p0 = scmp.ne.s32.totalorder %s641_s1, %s467_s28  ;;  %s31_s25 = int_to_ptr.vmem [resolvable:$true] %s30_s25 }
   0x3   :  { %p471_p1 = scmp.lt.u32.totalorder %s467_s28, %s641_s1 }
   0x5   :  { %p473_p2 = pnand %p471_p1, %p468_p0 }
   0x7   :  { %476 = shalt.err (!%p473_p2)
}
   0x8   :  { %s477_s10 = scalar_lea.vmem %s31_s25, 4096  ;;  %p482_p4 = scmp.lt.s32.totalorder %s31_s25, %s31_s25 }
   0x9   :  { %p478_p3 = scmp.ne.s32.totalorder %s31_s25, %s477_s10  ;;  %p483_p5 = scmp.lt.s32.totalorder %s477_s10, %s477_s10 }
   0xb   :  { %p484_p6 = por %p483_p5, %p482_p4 }
   0xd   :  { %p485_p7 = pnand %p484_p6, %p478_p3 }
   0xf   :  { %488 = shalt.err (!%p485_p7)
}
  0x10   :  { %s538_s11 = smov 256   ;;  %s539_s12 = smov 16  }
  0x11   :  { %36 = dma.hbm_to_vmem [thread:$0]  %s641_s1, 4096, %s31_s25, [#allocation7], %s538_s11, %s538_s11, %s539_s12  }
  0x12   :  { %s540_s15 = smov [#allocation4]   ;;  %s541_s17 = smov [#allocation8]  }
  0x13   :  { %s21_s16 = sshll.u32 %s540_s15, 4  ;;  %s44_s18 = sshll.u32 %s541_s17, 4  ;;  %s22_s16 = int_to_ptr.vmem [resolvable:$true] %s21_s16  ;;  %s45_s18 = int_to_ptr.vmem [resolvable:$true] %s44_s18 }
  0x14   :  { %s489_s21 = scalar_lea.hbm %s640_s0, 128 }
  0x15   :  { %p490_p8 = scmp.ne.s32.totalorder %s640_s0, %s489_s21  ;;  %p493_p9 = scmp.lt.u32.totalorder %s489_s21, %s640_s0 }
  0x17   :  { %p495_p10 = pnand %p493_p9, %p490_p8 }
  0x19   :  { %498 = shalt.err (!%p495_p10)
}
  0x1a   :  { %s499_s1 = scalar_lea.vmem %s22_s16, 128  ;;  %p504_p12 = scmp.lt.s32.totalorder %s22_s16, %s22_s16 }
  0x1b   :  { %p500_p11 = scmp.ne.s32.totalorder %s22_s16, %s499_s1  ;;  %p505_p13 = scmp.lt.s32.totalorder %s499_s1, %s499_s1 }
  0x1d   :  { %p506_p0 = por %p505_p13, %p504_p12 }
  0x1f   :  { %p507_p1 = pnand %p506_p0, %p500_p11 }
  0x21   :  { %510 = shalt.err (!%p507_p1)
}
  0x22   :  { %24 = dma.hbm_to_vmem [thread:$0]  %s640_s0, 128, %s22_s16, [#allocation5]  }
  0x23   :  { %s511_s30 = scalar_lea.hbm %s643_s3, 8192 }
  0x24   :  { %p512_p2 = scmp.ne.s32.totalorder %s643_s3, %s511_s30  ;;  %p515_p3 = scmp.lt.u32.totalorder %s511_s30, %s643_s3 }
  0x26   :  { %p517_p4 = pnand %p515_p3, %p512_p2 }
  0x28   :  { %520 = shalt.err (!%p517_p4)
}
  0x29   :  { %s521_s14 = scalar_lea.vmem %s45_s18, 8192  ;;  %p526_p6 = scmp.lt.s32.totalorder %s45_s18, %s45_s18 }
  0x2a   :  { %p522_p5 = scmp.ne.s32.totalorder %s45_s18, %s521_s14  ;;  %p527_p7 = scmp.lt.s32.totalorder %s521_s14, %s521_s14 }
  0x2c   :  { %p528_p8 = por %p527_p7, %p526_p6 }
  0x2e   :  { %p529_p9 = pnand %p528_p8, %p522_p5 }
  0x30   :  { %532 = shalt.err (!%p529_p9)
}
  0x31   :  { %50 = dma.hbm_to_vmem [thread:$0]  %s643_s3, 8192, %s45_s18, [#allocation7], %s538_s11, %s538_s11, %s539_s12  }
  0x32   :  { %533 = dma.done.wait [#allocation5], 128  }
  0x33   :  { %534 = vsyncadd [#allocation5], 4294967168 }
  0x34   :  { %535 = dma.done.wait [#allocation7], 12288  }
  0x35   :  { %536 = vsyncadd [#allocation7], 4294955008  ;;  %v542_v0 = vmov 0.0   ;;  %v72_v1 = vld [vmem:[#allocation6 + $0x8] sm:$0xff]  ;;  %v74_v2 = vld [vmem:[#allocation6 + $0x18] sm:$0xff]  ;;  %vm68_vm0 = vcmask 867328  }
  0x36   :  { %66 = vst [vmem:[#allocation2] sm:$0xff] %v542_v0  ;;  %179 = vmatprep.mubr.f32.mxu0 %v542_v0  ;;  %v71_v3 = vld [vmem:[#allocation6] sm:$0xff]  ;;  %v365_v4 = vpack.c.bf16 %v74_v2, %v72_v1  ;;  %v73_v5 = vld [vmem:[#allocation6 + $0x10] sm:$0xff]  ;;  %v76_v6 = vld [vmem:[#allocation6 + $0x28] sm:$0xff]  ;;  %vm357_vm1 = vcmask 7168  }
  0x37   :  { %v78_v7 = vld [vmem:[#allocation6 + $0x38] sm:$0xff]  ;;  %v367_v8 = vpack.c.bf16 %v73_v5, %v71_v3  ;;  %v75_v10 = vld [vmem:[#allocation6 + $0x20] sm:$0xff]  ;;  %v77_v11 = vld [vmem:[#allocation6 + $0x30] sm:$0xff] }
  0x38   :  { %v369_v9 = vpack.c.bf16 %v78_v7, %v76_v6  ;;  %v80_v12 = vld [vmem:[#allocation6 + $0x48] sm:$0xff]  ;;  %366 = vmatprep.subr.bf16.mxu0 %v365_v4  ;;  %v82_v13 = vld [vmem:[#allocation6 + $0x58] sm:$0xff]  ;;  %v371_v14 = vpack.c.bf16 %v77_v11, %v75_v10  ;;  %v79_v16 = vld [vmem:[#allocation6 + $0x40] sm:$0xff] }
  0x39   :  { %368 = vmatpush1.bf16.msra.mxu0 %v367_v8  ;;  %v373_v15 = vpack.c.bf16 %v82_v13, %v80_v12  ;;  %v81_v17 = vld [vmem:[#allocation6 + $0x50] sm:$0xff]  ;;  %v84_v18 = vld [vmem:[#allocation6 + $0x68] sm:$0xff]  ;;  %v86_v19 = vld [vmem:[#allocation6 + $0x78] sm:$0xff] }
  0x3a   :  { %370 = vmatprep.subr.bf16.mxu0 %v369_v9  ;;  %v375_v20 = vpack.c.bf16 %v81_v17, %v79_v16  ;;  %v377_v21 = vpack.c.bf16 %v86_v19, %v84_v18  ;;  %v83_v22 = vld [vmem:[#allocation6 + $0x60] sm:$0xff]  ;;  %v85_v23 = vld [vmem:[#allocation6 + $0x70] sm:$0xff]  ;;  %v88_v24 = vld [vmem:[#allocation6 + $0x88] sm:$0xff] }
  0x3b   :  { %v90_v25 = vld [vmem:[#allocation6 + $0x98] sm:$0xff]  ;;  %v87_v27 = vld [vmem:[#allocation6 + $0x80] sm:$0xff]  ;;  %v89_v28 = vld [vmem:[#allocation6 + $0x90] sm:$0xff]  ;;  %v379_v32 = vpack.c.bf16 %v85_v23, %v83_v22 }
  0x3c   :  { %v67_v26 = vld [vmem:[#allocation4] sm:$0xff]  ;;  %v189_v29 = vld [vmem:[#allocation8 + $0x8] sm:$0xff]  ;;  %v188_v31 = vld [vmem:[#allocation8] sm:$0xff]  ;;  %v381_v37 = vpack.c.bf16 %v90_v25, %v88_v24  ;;  %v383_v47 = vpack.c.bf16 %v89_v28, %v87_v27 }
  0x3d   :  { %372 = vmatpush1.bf16.msra.mxu0 %v371_v14  ;;  %69 = vst.msk [vmem:[#allocation2] sm:$0xff] %vm68_vm0, %v67_v26  ;;  %v191_v30 = vld [vmem:[#allocation8 + $0x18] sm:$0xff]  ;;  %v190_v34 = vld [vmem:[#allocation8 + $0x10] sm:$0xff]  ;;  %v193_v35 = vld [vmem:[#allocation8 + $0x28] sm:$0xff] }
  0x3e   :  { %374 = vmatprep.subr.bf16.mxu0 %v373_v15  ;;  %v397_v33 = vpack.c.bf16 %v191_v30, %v189_v29  ;;  %v195_v36 = vld [vmem:[#allocation8 + $0x38] sm:$0xff]  ;;  %v399_v38 = vpack.c.bf16 %v190_v34, %v188_v31  ;;  %v192_v40 = vld [vmem:[#allocation8 + $0x20] sm:$0xff]  ;;  %v194_v41 = vld [vmem:[#allocation8 + $0x30] sm:$0xff] }
  0x3f   :  { %v401_v39 = vpack.c.bf16 %v195_v36, %v193_v35  ;;  %v197_v42 = vld [vmem:[#allocation8 + $0x48] sm:$0xff]  ;;  %v94_v44 = vld [vmem:[#allocation6 + $0xb8] sm:$0xff]  ;;  %v403_v46 = vpack.c.bf16 %v194_v41, %v192_v40  ;;  %v91_v48 = vld [vmem:[#allocation6 + $0xa0] sm:$0xff] }
  0x40   :  { %v92_v43 = vld [vmem:[#allocation6 + $0xa8] sm:$0xff]  ;;  %398 = vmatprep.subr.bf16.mxu1 %v397_v33  ;;  %v199_v45 = vld [vmem:[#allocation8 + $0x58] sm:$0xff]  ;;  %v196_v50 = vld [vmem:[#allocation8 + $0x40] sm:$0xff] }
  0x41   :  { %376 = vmatpush1.bf16.msra.mxu0 %v375_v20  ;;  %400 = vmatpush1.bf16.msra.mxu1 %v399_v38  ;;  %v405_v49 = vpack.c.bf16 %v199_v45, %v197_v42  ;;  %v198_v51 = vld [vmem:[#allocation8 + $0x50] sm:$0xff]  ;;  %v385_v52 = vpack.c.bf16 %v94_v44, %v92_v43  ;;  %v201_v54 = vld [vmem:[#allocation8 + $0x68] sm:$0xff]  ;;  %v203_v55 = vld [vmem:[#allocation8 + $0x78] sm:$0xff] }
  0x42   :  { %378 = vmatprep.subr.bf16.mxu0 %v377_v21  ;;  %402 = vmatprep.subr.bf16.mxu1 %v401_v39  ;;  %v93_v53 = vld [vmem:[#allocation6 + $0xb0] sm:$0xff]  ;;  %v96_v56 = vld [vmem:[#allocation6 + $0xc8] sm:$0xff]  ;;  %v98_v57 = vld [vmem:[#allocation6 + $0xd8] sm:$0xff]  ;;  %v407_v58 = vpack.c.bf16 %v198_v51, %v196_v50  ;;  %v409_v61 = vpack.c.bf16 %v203_v55, %v201_v54 }
  0x43   :  { %v387_v59 = vpack.c.bf16 %v93_v53, %v91_v48  ;;  %v95_v60 = vld [vmem:[#allocation6 + $0xc0] sm:$0xff]  ;;  %v202_v63 = vld [vmem:[#allocation8 + $0x70] sm:$0xff]  ;;  %v389_v0 = vpack.c.bf16 %v98_v57, %v96_v56  ;;  %v205_v2 = vld [vmem:[#allocation8 + $0x88] sm:$0xff] }
  0x44   :  { %v200_v62 = vld [vmem:[#allocation8 + $0x60] sm:$0xff]  ;;  %v97_v1 = vld [vmem:[#allocation6 + $0xd0] sm:$0xff]  ;;  %v207_v3 = vld [vmem:[#allocation8 + $0x98] sm:$0xff] }
  0x45   :  { %380 = vmatpush1.bf16.msra.mxu0 %v379_v32  ;;  %404 = vmatpush1.bf16.msra.mxu1 %v403_v46  ;;  %v100_v4 = vld [vmem:[#allocation6 + $0xe8] sm:$0xff]  ;;  %v102_v5 = vld [vmem:[#allocation6 + $0xf8] sm:$0xff]  ;;  %v411_v6 = vpack.c.bf16 %v202_v63, %v200_v62  ;;  %v391_v7 = vpack.c.bf16 %v97_v1, %v95_v60  ;;  %v99_v8 = vld [vmem:[#allocation6 + $0xe0] sm:$0xff]  ;;  %v413_v9 = vpack.c.bf16 %v207_v3, %v205_v2 }
  0x46   :  { %382 = vmatprep.subr.bf16.mxu0 %v381_v37  ;;  %406 = vmatprep.subr.bf16.mxu1 %v405_v49  ;;  %v204_v10 = vld [vmem:[#allocation8 + $0x80] sm:$0xff]  ;;  %v206_v11 = vld [vmem:[#allocation8 + $0x90] sm:$0xff]  ;;  %v393_v12 = vpack.c.bf16 %v102_v5, %v100_v4  ;;  %v209_v14 = vld [vmem:[#allocation8 + $0xa8] sm:$0xff] }
  0x47   :  { %v101_v13 = vld [vmem:[#allocation6 + $0xf0] sm:$0xff]  ;;  %v211_v15 = vld [vmem:[#allocation8 + $0xb8] sm:$0xff]  ;;  %v415_v16 = vpack.c.bf16 %v206_v11, %v204_v10  ;;  %v208_v19 = vld [vmem:[#allocation8 + $0xa0] sm:$0xff] }
  0x48   :  { %v395_v17 = vpack.c.bf16 %v101_v13, %v99_v8  ;;  %v417_v18 = vpack.c.bf16 %v211_v15, %v209_v14  ;;  %v210_v20 = vld [vmem:[#allocation8 + $0xb0] sm:$0xff]  ;;  %v213_v21 = vld [vmem:[#allocation8 + $0xc8] sm:$0xff]  ;;  %v215_v22 = vld [vmem:[#allocation8 + $0xd8] sm:$0xff] }
  0x49   :  { %384 = vmatpush1.bf16.msra.mxu0 %v383_v47  ;;  %408 = vmatpush1.bf16.msra.mxu1 %v407_v58  ;;  %v419_v23 = vpack.c.bf16 %v210_v20, %v208_v19  ;;  %v70_v24 = vld [vmem:[#allocation2] sm:$0xff]  ;;  %v421_v25 = vpack.c.bf16 %v215_v22, %v213_v21  ;;  %v212_v26 = vld [vmem:[#allocation8 + $0xc0] sm:$0xff]  ;;  %v217_v28 = vld [vmem:[#allocation8 + $0xe8] sm:$0xff]  ;;  %v105_v19 = vlaneseq }
  0x4a   :  { %386 = vmatprep.subr.bf16.mxu0 %v385_v52  ;;  %410 = vmatprep.subr.bf16.mxu1 %v409_v61  ;;  %v214_v27 = vld [vmem:[#allocation8 + $0xd0] sm:$0xff]  ;;  %v219_v29 = vld [vmem:[#allocation8 + $0xf8] sm:$0xff]  ;;  %v216_v32 = vld [vmem:[#allocation8 + $0xe0] sm:$0xff] }
  0x4b   :  { %v423_v30 = vpack.c.bf16 %v214_v27, %v212_v26  ;;  %v425_v31 = vpack.c.bf16 %v219_v29, %v217_v28  ;;  %v218_v33 = vld [vmem:[#allocation8 + $0xf0] sm:$0xff]  ;;  %v221_v34 = vld [vmem:[#allocation8 + $0x108] sm:$0xff]  ;;  %v223_v35 = vld [vmem:[#allocation8 + $0x118] sm:$0xff]  ;;  %v106_v20 = vshrl.u32 %v105_v19, 7 }
  0x4c   :  { %v427_v36 = vpack.c.bf16 %v218_v33, %v216_v32  ;;  %v429_v37 = vpack.c.bf16 %v223_v35, %v221_v34  ;;  %v220_v38 = vld [vmem:[#allocation8 + $0x100] sm:$0xff]  ;;  %v222_v39 = vld [vmem:[#allocation8 + $0x110] sm:$0xff]  ;;  %v225_v40 = vld [vmem:[#allocation8 + $0x128] sm:$0xff] }
  0x4d   :  { %388 = vmatpush1.bf16.msra.mxu0 %v387_v59  ;;  %412 = vmatpush1.bf16.msra.mxu1 %v411_v6  ;;  %v227_v41 = vld [vmem:[#allocation8 + $0x138] sm:$0xff]  ;;  %v431_v42 = vpack.c.bf16 %v222_v39, %v220_v38  ;;  %v224_v44 = vld [vmem:[#allocation8 + $0x120] sm:$0xff]  ;;  %v226_v45 = vld [vmem:[#allocation8 + $0x130] sm:$0xff]  ;;  %v107_v21 = vsub.s32 0, %v106_v20 }
  0x4e   :  { %390 = vmatprep.subr.bf16.mxu0 %v389_v0  ;;  %414 = vmatprep.subr.bf16.mxu1 %v413_v9  ;;  %v433_v43 = vpack.c.bf16 %v227_v41, %v225_v40  ;;  %v229_v46 = vld [vmem:[#allocation8 + $0x148] sm:$0xff]  ;;  %v231_v47 = vld [vmem:[#allocation8 + $0x158] sm:$0xff]  ;;  %v435_v48 = vpack.c.bf16 %v226_v45, %v224_v44  ;;  %v228_v50 = vld [vmem:[#allocation8 + $0x140] sm:$0xff] }
  0x4f   :  { %v437_v49 = vpack.c.bf16 %v231_v47, %v229_v46  ;;  %v230_v51 = vld [vmem:[#allocation8 + $0x150] sm:$0xff]  ;;  %v233_v52 = vld [vmem:[#allocation8 + $0x168] sm:$0xff]  ;;  %v235_v53 = vld [vmem:[#allocation8 + $0x178] sm:$0xff]  ;;  %v355_v47 = vstv %s646_s6 }
  0x50   :  { %v439_v54 = vpack.c.bf16 %v230_v51, %v228_v50  ;;  %v441_v55 = vpack.c.bf16 %v235_v53, %v233_v52  ;;  %v232_v56 = vld [vmem:[#allocation8 + $0x160] sm:$0xff]  ;;  %v234_v57 = vld [vmem:[#allocation8 + $0x170] sm:$0xff]  ;;  %v237_v58 = vld [vmem:[#allocation8 + $0x188] sm:$0xff] }
  0x51   :  { %392 = vmatpush1.bf16.msra.mxu0 %v391_v7  ;;  %416 = vmatpush1.bf16.msra.mxu1 %v415_v16  ;;  %v239_v59 = vld [vmem:[#allocation8 + $0x198] sm:$0xff]  ;;  %v443_v60 = vpack.c.bf16 %v234_v57, %v232_v56  ;;  %v236_v62 = vld [vmem:[#allocation8 + $0x180] sm:$0xff]  ;;  %v238_v63 = vld [vmem:[#allocation8 + $0x190] sm:$0xff] }
  0x52   :  { %394 = vmatprep.subr.bf16.mxu0 %v393_v12  ;;  %418 = vmatprep.subr.bf16.mxu1 %v417_v18  ;;  %v445_v61 = vpack.c.bf16 %v239_v59, %v237_v58  ;;  %v241_v0 = vld [vmem:[#allocation8 + $0x1a8] sm:$0xff]  ;;  %v243_v1 = vld [vmem:[#allocation8 + $0x1b8] sm:$0xff]  ;;  %v447_v2 = vpack.c.bf16 %v238_v63, %v236_v62  ;;  %v240_v4 = vld [vmem:[#allocation8 + $0x1a0] sm:$0xff] }
  0x53   :  { %v449_v3 = vpack.c.bf16 %v243_v1, %v241_v0  ;;  %v242_v5 = vld [vmem:[#allocation8 + $0x1b0] sm:$0xff]  ;;  %v245_v6 = vld [vmem:[#allocation8 + $0x1c8] sm:$0xff]  ;;  %v247_v7 = vld [vmem:[#allocation8 + $0x1d8] sm:$0xff] }
  0x54   :  { %v451_v8 = vpack.c.bf16 %v242_v5, %v240_v4  ;;  %v453_v9 = vpack.c.bf16 %v247_v7, %v245_v6  ;;  %v244_v10 = vld [vmem:[#allocation8 + $0x1c0] sm:$0xff]  ;;  %v246_v11 = vld [vmem:[#allocation8 + $0x1d0] sm:$0xff]  ;;  %v249_v13 = vld [vmem:[#allocation8 + $0x1e8] sm:$0xff] }
  0x55   :  { %396 = vmatpush1.bf16.msra.mxu0 %v395_v17  ;;  %420 = vmatpush1.bf16.msra.mxu1 %v419_v23  ;;  %v455_v12 = vpack.c.bf16 %v246_v11, %v244_v10  ;;  %v251_v14 = vld [vmem:[#allocation8 + $0x1f8] sm:$0xff]  ;;  %v248_v16 = vld [vmem:[#allocation8 + $0x1e0] sm:$0xff]  ;;  %v250_v17 = vld [vmem:[#allocation8 + $0x1f0] sm:$0xff]  ;;  %v111_v23 = vsub.s32 1, %v106_v20 }
  0x56   :  { %422 = vmatprep.subr.bf16.mxu1 %v421_v25  ;;  %v457_v15 = vpack.c.bf16 %v251_v14, %v249_v13  ;;  %v459_v18 = vpack.c.bf16 %v250_v17, %v248_v16  ;;  %v103_v22 = vld [vmem:[%s642_s2] sm:$0x3] }
  0x57   :  { %v112_v25 = vrot.slane %v103_v22, %v111_v23  ;;  %v252_v32 = vld [vmem:[%s644_s4] sm:$0x3] }
  0x58   :  { %180 = vmatmul.mubr.f32.vlgmr.msra.gmra.mrb[0].mxu0 %v70_v24  ;;  %v108_v24 = vrot.slane %v103_v22, %v107_v21  ;;  %v257_v33 = vrot.slane %v252_v32, %v107_v21  ;;  %v261_v34 = vrot.slane %v252_v32, %v111_v23  ;;  %v337_v35 = vld [vmem:[%s645_s5] sm:$0x3] }
  0x59   :  { %424 = vmatpush1.bf16.msra.mxu1 %v423_v30  ;;  %v342_v39 = vrot.slane %v337_v35, %v107_v21  ;;  %v346_v41 = vrot.slane %v337_v35, %v111_v23 }
  0x5a   :  { %426 = vmatprep.subr.bf16.mxu1 %v425_v31 }
  0x5d   :  { %428 = vmatpush1.bf16.msra.mxu1 %v427_v36 }
  0x5e   :  { %430 = vmatprep.subr.bf16.mxu1 %v429_v37 }
  0x61   :  { %432 = vmatpush1.bf16.msra.mxu1 %v431_v42 }
  0x62   :  { %434 = vmatprep.subr.bf16.mxu1 %v433_v43 }
  0x65   :  { %436 = vmatpush1.bf16.msra.mxu1 %v435_v48 }
  0x66   :  { %438 = vmatprep.subr.bf16.mxu1 %v437_v49 }
  0x69   :  { %440 = vmatpush1.bf16.msra.mxu1 %v439_v54 }
  0x6a   :  { %442 = vmatprep.subr.bf16.mxu1 %v441_v55 }
  0x6d   :  { %444 = vmatpush1.bf16.msra.mxu1 %v443_v60 }
  0x6e   :  { %446 = vmatprep.subr.bf16.mxu1 %v445_v61 }
  0x71   :  { %448 = vmatpush1.bf16.msra.mxu1 %v447_v2 }
  0x72   :  { %450 = vmatprep.subr.bf16.mxu1 %v449_v3 }
  0x75   :  { %452 = vmatpush1.bf16.msra.mxu1 %v451_v8 }
  0x76   :  { %454 = vmatprep.subr.bf16.mxu1 %v453_v9 }
  0x79   :  { %456 = vmatpush1.bf16.msra.mxu1 %v455_v12 }
  0x7a   :  { %458 = vmatprep.subr.bf16.mxu1 %v457_v15 }
  0x7d   :  { %460 = vmatpush1.bf16.msra.mxu1 %v459_v18 }
 0x12b   :  { %v181_v26 = vpop.f32.mrb[0].mxu0 }
 0x12c   :  { %v182_v27 = vadd.f32 %v181_v26, %v108_v24  ;;  %v183_v28 = vpop.f32.mrb[1].mxu0 }
 0x12d   :  { %v184_v29 = vadd.f32 %v183_v28, %v112_v25 }
 0x12e   :  { %v186_v31 = vmax.f32 %v182_v27, 0.0 }
 0x12f   :  { %v187_v30 = vmax.f32 %v184_v29, 0.0 }
 0x131   :  { %328 = vmatprep.mubr.f32.mxu1 %v187_v30 }
 0x132   :  { %329 = vmatmul.mubr.f32.vlgmr.msra.gmra.mrb[0].mxu1 %v186_v31 }
 0x205   :  { %v330_v36 = vpop.f32.mrb[0].mxu1 }
 0x206   :  { %v331_v37 = vadd.f32 %v330_v36, %v257_v33  ;;  %v332_v38 = vpop.f32.mrb[1].mxu1 }
 0x207   :  { %v333_v40 = vadd.f32 %v332_v38, %v261_v34 }
 0x208   :  { %v335_v42 = vmax.f32 %v331_v37, 0.0 }
 0x209   :  { %v336_v43 = vmax.f32 %v333_v40, 0.0 }
 0x20a   :  { %v349_v44 = vmul.f32 %v342_v39, %v335_v42 }
 0x20b   :  { %v350_v45 = vmul.f32 %v346_v41, %v336_v43 }
 0x20d   :  { %v351_v46 = vadd.f32 %v350_v45, %v349_v44 }
 0x20f   :  { %352 = vadd.xlane.f32.xlu0 %v351_v46 }
 0x29c   :  { %v353_v48 = vpop.xlane.xlu0 %352 }
 0x29d   :  { %v356_v49 = vadd.f32 %v355_v47, %v353_v48 }
 0x29f   :  { %358 = vst.msk [vmem:[%s647_s7] sm:$0xff] %vm357_vm1, %v356_v49 }
 0x2a0   :  { %363 = vsyncpa [#allocation5], 1 }
 0x2a1   :  { %364 = vsyncpa [#allocation7], 1 }

</bundles_post_ra>
